<compile_context>
chip_gen: v7x
topology: tpu7x:2x2x1
jax: 0.10.0
libtpu: 0.0.40
codegen_flags: <defaults>
</compile_context>

<pallas_src>
import functools

import jax
import jax.numpy as jnp
from jax.experimental import pallas as pl
from jax.experimental.pallas import tpu as pltpu


# --------------------------- generation-aware VMEM --------------------------- #

def _tpu_vmem_capacity_bytes():
    try:
        info = pltpu.get_tpu_info()
        cap = getattr(info, "vmem_capacity_bytes", None)
        if cap:
            return int(cap)
    except Exception:
        pass
    return 64 * 1024 * 1024          # conservative (v7x-sized) fallback


_VMEM_CAP = _tpu_vmem_capacity_bytes()
# scoped limit: ~48 MiB on v7x (64 MiB physical), ~96 MiB on v5e/v6e (128 MiB).
_VMEM_LIMIT = max(32 * 1024 * 1024, min(3 * _VMEM_CAP // 4, 96 * 1024 * 1024))
# per-call working-set target: ~21 MiB on v7x, ~40 MiB on v5e/v6e.
_VMEM_BLOCK_BUDGET = min(_VMEM_CAP // 3, 40 * 1024 * 1024)


# ------------------------------- Pallas kernels ------------------------------ #

def _conv_kernel(xm_ref, xh_ref, w01_ref, w2_ref, b_ref, o_ref, xbuf_ref):
    # xm_ref  : (1, 2*TH, Wo+1, 2*Cin) bf16 — padded rows [2*TH*r, 2*TH*(r+1))
    #           in the column-pair view (lane dim = 2*Cin).
    # xh_ref  : (1, 1, Wo+1, 2*Cin)    bf16 — halo row 2*TH*(r+1).
    # w01_ref : (3, 2*Cin, TCout)      bf16 — taps kw=0,1 fused along K.
    # w2_ref  : (3,   Cin, TCout)      bf16 — tap kw=2.
    # b_ref   : (1, TCout)             f32.
    # o_ref   : (1, TH, Wo, TCout).
    # xbuf_ref: (TH+1, 2, Wo+1, 2*Cin) bf16 scratch; [i, p] = padded row 2*i+p.
    _, TH, Wo, TCout = o_ref.shape
    Cin = w2_ref.shape[1]

    @pl.when(pl.program_id(2) == 0)      # refill only when the row tile changes
    def _fill():
        # One contiguous copy: the (row-pair, parity) split is just a reshape of
        # the leading dim — no strided gathers.
        xbuf_ref[0:TH] = xm_ref[0].reshape(TH, 2, Wo + 1, 2 * Cin)
        xbuf_ref[TH, 0] = xh_ref[0, 0]
        # Parity-1 of the halo slot is never read; keep it deterministic.
        xbuf_ref[TH, 1] = jnp.zeros((Wo + 1, 2 * Cin), xbuf_ref.dtype)

    # f32 accumulator kept as a local value (vregs / compiler-managed VMEM),
    # seeded with the bias so there is no separate bias pass.
    acc = jnp.broadcast_to(b_ref[...], (TH * Wo, TCout)).astype(jnp.float32)
    for kh in range(3):
        i0, p = kh // 2, kh % 2          # padded row 2*i + kh == xbuf[i + i0, p]
        # taps kw=0,1: column pair j holds cols (2j, 2j+1) -> one K=2*Cin matmul
        a = xbuf_ref[i0:i0 + TH, p, 0:Wo, :]
        acc += jnp.dot(a.reshape(TH * Wo, 2 * Cin), w01_ref[kh],
                       preferred_element_type=jnp.float32)
        # tap kw=2: col 2j+2 == first Cin lanes of column pair j+1
        c = xbuf_ref[i0:i0 + TH, p, 1:Wo + 1, 0:Cin]
        acc += jnp.dot(c.reshape(TH * Wo, Cin), w2_ref[kh],
                       preferred_element_type=jnp.float32)
    # TODO(synk): fuse all three kw taps into a single K=3*Cin matmul (full
    # im2col along kw) for very small Cin once lane-offset scratch writes are
    # worth the extra staging bandwidth.

    o_ref[0] = acc.reshape(TH, Wo, TCout).astype(o_ref.dtype)


def _avgpool_kernel(x_ref, p_ref, o_ref):
    # x_ref: (1, TC, Ho, 2*W) — image rows (2i, 2i+1) laid out along the lanes
    # p_ref: (2*W, Wo) bf16   — 0.25-valued 2x2 pooling matrix
    # o_ref: (1, TC, Ho, Wo)
    _, TC, Ho, Wo = o_ref.shape
    W2 = x_ref.shape[3]
    xm = x_ref[0].reshape(TC * Ho, W2)
    p = p_ref[...]
    if jnp.dtype(x_ref.dtype) == jnp.dtype(jnp.bfloat16):
        out = jnp.dot(xm, p, preferred_element_type=jnp.float32)
    else:
        # hi/lo bf16 split keeps f32 inputs accurate to ~1e-5.
        xf = xm.astype(jnp.float32)
        hi = xf.astype(jnp.bfloat16)
        lo = (xf - hi.astype(jnp.float32)).astype(jnp.bfloat16)
        out = jnp.dot(hi, p, preferred_element_type=jnp.float32)
        out = out + jnp.dot(lo, p, preferred_element_type=jnp.float32)
    o_ref[0] = out.reshape(TC, Ho, Wo).astype(o_ref.dtype)


# -------------------------------- tile sizing -------------------------------- #

def _pick_cout_tile(Cin, Cout, budget):
    """Largest legal Cout tile whose double-buffered bf16 weights fit ~1/3 budget."""
    def wbytes(t):
        return 2 * 9 * Cin * t * 2
    if wbytes(Cout) <= budget // 3:
        return Cout
    cands = [t for t in range(128, Cout, 128) if Cout % t == 0]
    if not cands:
        return Cout                       # cannot tile legally; accept full width
    fitting = [t for t in cands if wbytes(t) <= budget // 3]
    return max(fitting) if fitting else min(cands)


def _pick_row_tile(N, Ho, Wo, Cin, TCout, out_itemsize, budget):
    def need(th):
        blk_in = 2 * (2 * th) * (Wo + 1) * (2 * Cin) * 2   # main block (bf16, dbuf)
        blk_halo = 2 * (Wo + 1) * (2 * Cin) * 2
        blk_out = 2 * th * Wo * TCout * out_itemsize
        weights = 2 * 9 * Cin * TCout * 2 + 2 * TCout * 4  # resident, double-buffered
        xbuf = (th + 1) * 2 * (Wo + 1) * (2 * Cin) * 2
        acc = th * Wo * TCout * 4
        stage = th * Wo * 2 * Cin * 2                      # one matmul operand copy
        return blk_in + blk_halo + blk_out + weights + xbuf + acc + stage

    th = Ho
    while th > 1 and need(th) > budget:
        th -= 1
    if N == 1 and th == Ho and Ho > 1:    # keep both v7x TensorCores busy
        th = (Ho + 1) // 2
    return th


def _pick_chan_tile(N, C, Ho, W, Wo, itemsize, budget):
    best = 1
    for tc in range(1, C + 1):
        if C % tc:
            continue
        need = (2 * tc * Ho * 2 * W * itemsize             # input blocks (dbuf)
                + 2 * tc * Ho * Wo * itemsize              # output blocks (dbuf)
                + 3 * tc * Ho * 2 * W * 2                  # hi/lo bf16 staging
                + tc * Ho * 2 * W * 4                      # f32 staging
                + 2 * 2 * W * Wo * 2)                      # pooling matrix
        if need <= budget:
            best = tc
    if N == 1 and best == C and C > 1:                     # >=2 parallel steps for v7x
        for tc in range(best - 1, 0, -1):
            if C % tc == 0:
                best = tc
                break
    return best


# ------------------------------- JAX wrappers -------------------------------- #

@functools.partial(jax.jit, static_argnames=("padding",))
def downsample_conv2d(x_nchw, w_hwio, bias, *, padding=1):
    """Conv2d(Cin, Cout, 3, stride=2, padding=padding) on an NCHW input."""
    N, C, H, W = x_nchw.shape
    KH, KW, Cin, Cout = w_hwio.shape
    assert C == Cin and KH == 3 and KW == 3
    out_dtype = x_nchw.dtype
    out_itemsize = jnp.dtype(out_dtype).itemsize

    Hp, Wp = H + 2 * padding, W + 2 * padding
    Ho = (Hp - KH) // 2 + 1
    Wo = (Wp - KW) // 2 + 1
    assert Ho >= 1 and Wo >= 1

    TCout = _pick_cout_tile(Cin, Cout, _VMEM_BLOCK_BUDGET)
    nCo = Cout // TCout
    TH = _pick_row_tile(N, Ho, Wo, Cin, TCout, out_itemsize, _VMEM_BLOCK_BUDGET)
    nR = -(-Ho // TH)
    Ho_pad = nR * TH                      # extra output rows land on zero pad rows
    Hp_pad = max(Hp, 2 * Ho_pad + 1)
    Wp_pad = 2 * (Wo + 1)                 # even width so the column-pair view is exact

    # NCHW -> NHWC, bf16 cast, zero pad (conv pad + alignment pad): one fused XLA pass.
    x = jnp.transpose(x_nchw, (0, 2, 3, 1)).astype(jnp.bfloat16)
    x = jnp.pad(x, ((0, 0),
                    (padding, Hp_pad - H - padding),
                    (padding, Wp_pad - W - padding),
                    (0, 0)))
    # Column-pair view: xv[n, h, j, q*Cin + c] == x_padded[n, h, 2*j + q, c] (free reshape).
    xv = x.reshape(N, Hp_pad, Wo + 1, 2 * Cin)

    w01 = w_hwio[:, 0:2].reshape(KH, 2 * Cin, Cout).astype(jnp.bfloat16)
    w2 = w_hwio[:, 2].astype(jnp.bfloat16)
    b2 = bias.astype(jnp.float32).reshape(1, Cout)

    out_nhwc = pl.pallas_call(
        _conv_kernel,
        out_shape=jax.ShapeDtypeStruct((N, Ho_pad, Wo, Cout), out_dtype),
        grid=(N, nR, nCo),
        in_specs=[
            pl.BlockSpec((1, 2 * TH, Wo + 1, 2 * Cin), lambda n, r, co: (n, r, 0, 0)),
            # TODO(synk): merge this 1-row halo DMA into the main block once
            # overlapping (element-indexed) row windows are worth the risk.
            pl.BlockSpec((1, 1, Wo + 1, 2 * Cin),
                         lambda n, r, co: (n, 2 * TH * (r + 1), 0, 0)),
            pl.BlockSpec((KH, 2 * Cin, TCout), lambda n, r, co: (0, 0, co)),
            pl.BlockSpec((KH, Cin, TCout), lambda n, r, co: (0, 0, co)),
            pl.BlockSpec((1, TCout), lambda n, r, co: (0, co)),
        ],
        out_specs=pl.BlockSpec((1, TH, Wo, TCout), lambda n, r, co: (n, r, 0, co)),
        scratch_shapes=[pltpu.VMEM((TH + 1, 2, Wo + 1, 2 * Cin), jnp.bfloat16)],
        compiler_params=pltpu.CompilerParams(
            dimension_semantics=("parallel", "parallel", "arbitrary"),
            vmem_limit_bytes=_VMEM_LIMIT),
        cost_estimate=pl.CostEstimate(
            flops=2 * N * Ho * Wo * KH * KW * Cin * Cout,
            transcendentals=0,
            bytes_accessed=(xv.size * 2 + w01.size * 2 + w2.size * 2
                            + b2.size * 4 + N * Ho * Wo * Cout * out_itemsize)),
    )(xv, xv, w01, w2, b2)

    # TODO(synk): if the surrounding model is NHWC-native, drop both transposes.
    return jnp.transpose(out_nhwc[:, :Ho], (0, 3, 1, 2))


@jax.jit
def downsample_avgpool2d(x_nchw):
    """AvgPool2d(kernel_size=2, stride=2) on NCHW input (floor, like PyTorch)."""
    N, C, H, W = x_nchw.shape
    Ho, Wo = H // 2, W // 2
    itemsize = jnp.dtype(x_nchw.dtype).itemsize

    xv = x_nchw if H % 2 == 0 else x_nchw[:, :, :2 * Ho, :]
    xv = xv.reshape(N, C, Ho, 2 * W)      # free reshape: row pair -> lane dim

    TC = _pick_chan_tile(N, C, Ho, W, Wo, itemsize, _VMEM_BLOCK_BUDGET)
    nC = C // TC

    # 2x2 average as one (2W, Wo) matmul: rows [0,W) are the even image row,
    # rows [W,2W) the odd one; columns >= 2*Wo map to nothing (floor for odd W).
    col = jnp.arange(2 * W) % W
    pool = jnp.where((col[:, None] // 2 == jnp.arange(Wo)[None, :])
                     & (col[:, None] < 2 * Wo), 0.25, 0.0).astype(jnp.bfloat16)

    return pl.pallas_call(
        _avgpool_kernel,
        out_shape=jax.ShapeDtypeStruct((N, C, Ho, Wo), x_nchw.dtype),
        grid=(N, nC),
        in_specs=[
            pl.BlockSpec((1, TC, Ho, 2 * W), lambda n, c: (n, c, 0, 0)),
            pl.BlockSpec((2 * W, Wo), lambda n, c: (0, 0)),
        ],
        out_specs=pl.BlockSpec((1, TC, Ho, Wo), lambda n, c: (n, c, 0, 0)),
        compiler_params=pltpu.CompilerParams(
            dimension_semantics=("parallel", "parallel"),
            vmem_limit_bytes=_VMEM_LIMIT),
        cost_estimate=pl.CostEstimate(
            flops=2 * 2 * N * C * Ho * 2 * W * Wo,
            transcendentals=0,
            bytes_accessed=(N * C * Ho * 2 * W + N * C * Ho * Wo) * itemsize),
    )(xv, pool)


class Downsample:
    """JAX/Pallas port of the PyTorch Downsample module (dims=2 paths)."""

    def __init__(self, channels, use_conv, dims=2, out_channels=None, padding=1,
                 key=None):
        # TODO(synk): dims=1 and dims=3 variants not implemented (only 2D).
        assert dims == 2, "only the 2D path is implemented"
        self.channels = channels
        self.out_channels = out_channels or channels
        self.use_conv = use_conv
        self.padding = padding
        if use_conv:
            if key is None:
                key = jax.random.PRNGKey(0)
            kw_, kb_ = jax.random.split(key)
            fan_in = channels * 3 * 3
            bound = 1.0 / (fan_in ** 0.5)
            # master weights stored f32 HWIO (PyTorch equivalent is OIHW).
            self.w = jax.random.uniform(kw_, (3, 3, channels, self.out_channels),
                                        jnp.float32, -bound, bound)
            self.b = jax.random.uniform(kb_, (self.out_channels,),
                                        jnp.float32, -bound, bound)
        else:
            assert channels == self.out_channels

    def __call__(self, x_nchw):
        assert x_nchw.shape[1] == self.channels
        if self.use_conv:
            return downsample_conv2d(x_nchw, self.w, self.b,
                                     padding=self.padding)
        return downsample_avgpool2d(x_nchw)


# ----------------------------------- main ------------------------------------ #

if __name__ == "__main__":
    key = jax.random.PRNGKey(0)
    k_x, k_p, k_x2 = jax.random.split(key, 3)
    N, C, H, W = 2, 4, 16, 16
    x = jax.random.normal(k_x, (N, C, H, W), jnp.float32)

    # ---- use_conv=True: Conv2d(C, C, 3, stride=2, padding=1) ----
    mod = Downsample(channels=C, use_conv=True, dims=2, padding=1, key=k_p)
    y = jax.block_until_ready(mod(x))
    assert y.shape == (N, C, H // 2, W // 2), y.shape

    # reference with inputs rounded to bf16 (kernel feeds the MXU in bf16,
    # accumulates in f32), so a tight tolerance is meaningful.
    xq = x.astype(jnp.bfloat16).astype(jnp.float32)
    wq = mod.w.astype(jnp.bfloat16).astype(jnp.float32)
    y_ref = jax.lax.conv_general_dilated(
        xq, jnp.transpose(wq, (3, 2, 0, 1)), window_strides=(2, 2),
        padding=((1, 1), (1, 1)), dimension_numbers=("NCHW", "OIHW", "NCHW"),
        precision=jax.lax.Precision.HIGHEST) + mod.b.reshape(1, C, 1, 1)
    assert jnp.allclose(y, y_ref, atol=2e-4, rtol=2e-4), \
        float(jnp.max(jnp.abs(y - y_ref)))

    # odd spatial size + padding=0 (locks in halo / edge handling + Ho padding)
    x_odd = jax.random.normal(k_x2, (1, C, 17, 17), jnp.float32)
    mod0 = Downsample(channels=C, use_conv=True, dims=2, padding=0, key=k_p)
    y0 = jax.block_until_ready(mod0(x_odd))
    assert y0.shape == (1, C, 8, 8), y0.shape
    xq0 = x_odd.astype(jnp.bfloat16).astype(jnp.float32)
    y0_ref = jax.lax.conv_general_dilated(
        xq0, jnp.transpose(wq, (3, 2, 0, 1)), window_strides=(2, 2),
        padding=((0, 0), (0, 0)), dimension_numbers=("NCHW", "OIHW", "NCHW"),
        precision=jax.lax.Precision.HIGHEST) + mod0.b.reshape(1, C, 1, 1)
    assert jnp.allclose(y0, y0_ref, atol=2e-4, rtol=2e-4), \
        float(jnp.max(jnp.abs(y0 - y0_ref)))

    # ---- use_conv=False: AvgPool2d(kernel_size=2, stride=2) ----
    mod2 = Downsample(channels=C, use_conv=False, dims=2)
    y2 = jax.block_until_ready(mod2(x))
    assert y2.shape == (N, C, H // 2, W // 2), y2.shape
    y2_ref = jnp.mean(x.reshape(N, C, H // 2, 2, W // 2, 2), axis=(3, 5))
    assert jnp.allclose(y2, y2_ref, atol=1e-4, rtol=1e-4), \
        float(jnp.max(jnp.abs(y2 - y2_ref)))

    # odd spatial size: floor behaviour (matches PyTorch ceil_mode=False)
    y3 = jax.block_until_ready(mod2(x_odd))
    assert y3.shape == (1, C, 8, 8), y3.shape
    y3_ref = jnp.mean(x_odd[:, :, :16, :16].reshape(1, C, 8, 2, 8, 2),
                      axis=(3, 5))
    assert jnp.allclose(y3, y3_ref, atol=1e-4, rtol=1e-4), \
        float(jnp.max(jnp.abs(y3 - y3_ref)))

    print("KERNEL_OK")
</pallas_src>

<mosaic_0001>
module attributes {stable_mosaic.version = 11 : i64} {
  func.func @_conv_kernel(%arg0: i32, %arg1: i32, %arg2: i32, %arg3: memref<1x16x9x8xbf16, #tpu.memory_space<vmem>>, %arg4: memref<1x1x9x8xbf16, #tpu.memory_space<vmem>>, %arg5: memref<3x8x4xbf16, #tpu.memory_space<vmem>>, %arg6: memref<3x4x4xbf16, #tpu.memory_space<vmem>>, %arg7: memref<1x4xf32, #tpu.memory_space<vmem>>, %arg8: memref<1x8x8x4xf32, #tpu.memory_space<vmem>>, %arg9: memref<9x2x9x8xbf16, #tpu.memory_space<vmem>>) attributes {dimension_semantics = [#tpu.dimension_semantics<parallel>, #tpu.dimension_semantics<parallel>, #tpu.dimension_semantics<arbitrary>], iteration_bounds = array<i64: 2, 1, 1>, scalar_prefetch = 0 : i64, scratch_operands = 1 : i64, tpu.core_type = #tpu.core_type<tc>, window_params = [{transform_indices = @transform_0, window_bounds = array<i64: 1, 16, 9, 8>}, {transform_indices = @transform_1, window_bounds = array<i64: 1, 1, 9, 8>}, {transform_indices = @transform_2, window_bounds = array<i64: 3, 8, 4>}, {transform_indices = @transform_3, window_bounds = array<i64: 3, 4, 4>}, {transform_indices = @transform_4, window_bounds = array<i64: 1, 4>}, {transform_indices = @transform_5, window_bounds = array<i64: 1, 8, 8, 4>}]} {
    %c0_i32 = arith.constant 0 : i32
    %0 = arith.cmpi eq, %arg2, %c0_i32 : i32
    %1 = arith.extui %0 : i1 to i32
    %c0_i32_0 = arith.constant 0 : i32
    %2 = arith.cmpi ne, %1, %c0_i32_0 : i32
    scf.if %2 {
      %c0_51 = arith.constant 0 : index
      %c0_52 = arith.constant 0 : index
      %c0_53 = arith.constant 0 : index
      %c0_54 = arith.constant 0 : index
      %52 = vector.load %arg3[%c0_51, %c0_52, %c0_53, %c0_54] : memref<1x16x9x8xbf16, #tpu.memory_space<vmem>>, vector<1x16x9x8xbf16>
      %53 = vector.shape_cast %52 : vector<1x16x9x8xbf16> to vector<16x9x8xbf16>
      %54 = vector.shape_cast %53 : vector<16x9x8xbf16> to vector<8x2x9x8xbf16>
      %c0_55 = arith.constant 0 : index
      %c0_56 = arith.constant 0 : index
      %c0_57 = arith.constant 0 : index
      %c0_58 = arith.constant 0 : index
      %55 = vector.load %arg9[%c0_55, %c0_56, %c0_57, %c0_58] : memref<9x2x9x8xbf16, #tpu.memory_space<vmem>>, vector<8x2x9x8xbf16>
      tpu.vector_store %arg9[%c0_55, %c0_56, %c0_57, %c0_58], %54 {strides = array<i32>} : memref<9x2x9x8xbf16, #tpu.memory_space<vmem>>, vector<8x2x9x8xbf16>,
      %c0_59 = arith.constant 0 : index
      %c0_60 = arith.constant 0 : index
      %c0_61 = arith.constant 0 : index
      %c0_62 = arith.constant 0 : index
      %56 = vector.load %arg4[%c0_59, %c0_60, %c0_61, %c0_62] : memref<1x1x9x8xbf16, #tpu.memory_space<vmem>>, vector<1x1x9x8xbf16>
      %57 = vector.shape_cast %56 : vector<1x1x9x8xbf16> to vector<9x8xbf16>
      %c8 = arith.constant 8 : index
      %c0_63 = arith.constant 0 : index
      %c0_64 = arith.constant 0 : index
      %c0_65 = arith.constant 0 : index
      %58 = vector.load %arg9[%c8, %c0_63, %c0_64, %c0_65] : memref<9x2x9x8xbf16, #tpu.memory_space<vmem>>, vector<1x1x9x8xbf16>
      %59 = vector.shape_cast %58 : vector<1x1x9x8xbf16> to vector<9x8xbf16>
      %60 = vector.shape_cast %57 : vector<9x8xbf16> to vector<1x1x9x8xbf16>
      tpu.vector_store %arg9[%c8, %c0_63, %c0_64, %c0_65], %60 {strides = array<i32>} : memref<9x2x9x8xbf16, #tpu.memory_space<vmem>>, vector<1x1x9x8xbf16>,
      %cst_66 = arith.constant 0.000000e+00 : bf16
      %61 = vector.broadcast %cst_66 : bf16 to vector<9x8xbf16>
      %c8_67 = arith.constant 8 : index
      %c1_68 = arith.constant 1 : index
      %c0_69 = arith.constant 0 : index
      %c0_70 = arith.constant 0 : index
      %62 = vector.load %arg9[%c8_67, %c1_68, %c0_69, %c0_70] : memref<9x2x9x8xbf16, #tpu.memory_space<vmem>>, vector<1x1x9x8xbf16>
      %63 = vector.shape_cast %62 : vector<1x1x9x8xbf16> to vector<9x8xbf16>
      %64 = vector.shape_cast %61 : vector<9x8xbf16> to vector<1x1x9x8xbf16>
      tpu.vector_store %arg9[%c8_67, %c1_68, %c0_69, %c0_70], %64 {strides = array<i32>} : memref<9x2x9x8xbf16, #tpu.memory_space<vmem>>, vector<1x1x9x8xbf16>,
    } else {
    }
    %c0 = arith.constant 0 : index
    %c0_1 = arith.constant 0 : index
    %3 = vector.load %arg7[%c0, %c0_1] : memref<1x4xf32, #tpu.memory_space<vmem>>, vector<1x4xf32>
    %4 = vector.shape_cast %3 : vector<1x4xf32> to vector<1x4xf32>
    %5 = vector.broadcast %4 : vector<1x4xf32> to vector<64x4xf32>
    %c0_2 = arith.constant 0 : index
    %c0_3 = arith.constant 0 : index
    %c0_4 = arith.constant 0 : index
    %c0_5 = arith.constant 0 : index
    %6 = vector.load %arg9[%c0_2, %c0_3, %c0_4, %c0_5] : memref<9x2x9x8xbf16, #tpu.memory_space<vmem>>, vector<8x1x8x8xbf16>
    %7 = vector.shape_cast %6 : vector<8x1x8x8xbf16> to vector<8x8x8xbf16>
    %8 = vector.shape_cast %7 : vector<8x8x8xbf16> to vector<64x8xbf16>
    %c0_6 = arith.constant 0 : index
    %c0_7 = arith.constant 0 : index
    %c0_8 = arith.constant 0 : index
    %9 = vector.load %arg5[%c0_6, %c0_7, %c0_8] : memref<3x8x4xbf16, #tpu.memory_space<vmem>>, vector<1x8x4xbf16>
    %10 = vector.shape_cast %9 : vector<1x8x4xbf16> to vector<8x4xbf16>
    %cst = arith.constant dense<0.000000e+00> : vector<64x4xf32>
    %11 = tpu.matmul %8, %10, %cst {dimension_numbers = #tpu.dot_dimension_numbers<[1], [0], [0], [1], [0, 0, 1, 1], [], []>} : vector<64x8xbf16>, vector<8x4xbf16>, vector<64x4xf32> -> vector<64x4xf32>
    %12 = arith.addf %5, %11 : vector<64x4xf32>
    %c0_9 = arith.constant 0 : index
    %c0_10 = arith.constant 0 : index
    %c1 = arith.constant 1 : index
    %c0_11 = arith.constant 0 : index
    %13 = vector.load %arg9[%c0_9, %c0_10, %c1, %c0_11] : memref<9x2x9x8xbf16, #tpu.memory_space<vmem>>, vector<8x1x8x4xbf16>
    %14 = vector.shape_cast %13 : vector<8x1x8x4xbf16> to vector<8x8x4xbf16>
    %15 = vector.shape_cast %14 : vector<8x8x4xbf16> to vector<64x4xbf16>
    %c0_12 = arith.constant 0 : index
    %c0_13 = arith.constant 0 : index
    %c0_14 = arith.constant 0 : index
    %16 = vector.load %arg6[%c0_12, %c0_13, %c0_14] : memref<3x4x4xbf16, #tpu.memory_space<vmem>>, vector<1x4x4xbf16>
    %17 = vector.shape_cast %16 : vector<1x4x4xbf16> to vector<4x4xbf16>
    %cst_15 = arith.constant dense<0.000000e+00> : vector<64x4xf32>
    %18 = tpu.matmul %15, %17, %cst_15 {dimension_numbers = #tpu.dot_dimension_numbers<[1], [0], [0], [1], [0, 0, 1, 1], [], []>} : vector<64x4xbf16>, vector<4x4xbf16>, vector<64x4xf32> -> vector<64x4xf32>
    %19 = arith.addf %12, %18 : vector<64x4xf32>
    %c0_16 = arith.constant 0 : index
    %c1_17 = arith.constant 1 : index
    %c0_18 = arith.constant 0 : index
    %c0_19 = arith.constant 0 : index
    %20 = vector.load %arg9[%c0_16, %c1_17, %c0_18, %c0_19] : memref<9x2x9x8xbf16, #tpu.memory_space<vmem>>, vector<8x1x8x8xbf16>
    %21 = vector.shape_cast %20 : vector<8x1x8x8xbf16> to vector<8x8x8xbf16>
    %22 = vector.shape_cast %21 : vector<8x8x8xbf16> to vector<64x8xbf16>
    %c1_20 = arith.constant 1 : index
    %c0_21 = arith.constant 0 : index
    %c0_22 = arith.constant 0 : index
    %23 = vector.load %arg5[%c1_20, %c0_21, %c0_22] : memref<3x8x4xbf16, #tpu.memory_space<vmem>>, vector<1x8x4xbf16>
    %24 = vector.shape_cast %23 : vector<1x8x4xbf16> to vector<8x4xbf16>
    %cst_23 = arith.constant dense<0.000000e+00> : vector<64x4xf32>
    %25 = tpu.matmul %22, %24, %cst_23 {dimension_numbers = #tpu.dot_dimension_numbers<[1], [0], [0], [1], [0, 0, 1, 1], [], []>} : vector<64x8xbf16>, vector<8x4xbf16>, vector<64x4xf32> -> vector<64x4xf32>
    %26 = arith.addf %19, %25 : vector<64x4xf32>
    %c0_24 = arith.constant 0 : index
    %c1_25 = arith.constant 1 : index
    %c1_26 = arith.constant 1 : index
    %c0_27 = arith.constant 0 : index
    %27 = vector.load %arg9[%c0_24, %c1_25, %c1_26, %c0_27] : memref<9x2x9x8xbf16, #tpu.memory_space<vmem>>, vector<8x1x8x4xbf16>
    %28 = vector.shape_cast %27 : vector<8x1x8x4xbf16> to vector<8x8x4xbf16>
    %29 = vector.shape_cast %28 : vector<8x8x4xbf16> to vector<64x4xbf16>
    %c1_28 = arith.constant 1 : index
    %c0_29 = arith.constant 0 : index
    %c0_30 = arith.constant 0 : index
    %30 = vector.load %arg6[%c1_28, %c0_29, %c0_30] : memref<3x4x4xbf16, #tpu.memory_space<vmem>>, vector<1x4x4xbf16>
    %31 = vector.shape_cast %30 : vector<1x4x4xbf16> to vector<4x4xbf16>
    %cst_31 = arith.constant dense<0.000000e+00> : vector<64x4xf32>
    %32 = tpu.matmul %29, %31, %cst_31 {dimension_numbers = #tpu.dot_dimension_numbers<[1], [0], [0], [1], [0, 0, 1, 1], [], []>} : vector<64x4xbf16>, vector<4x4xbf16>, vector<64x4xf32> -> vector<64x4xf32>
    %33 = arith.addf %26, %32 : vector<64x4xf32>
    %c1_32 = arith.constant 1 : index
    %c0_33 = arith.constant 0 : index
    %c0_34 = arith.constant 0 : index
    %c0_35 = arith.constant 0 : index
    %34 = vector.load %arg9[%c1_32, %c0_33, %c0_34, %c0_35] : memref<9x2x9x8xbf16, #tpu.memory_space<vmem>>, vector<8x1x8x8xbf16>
    %35 = vector.shape_cast %34 : vector<8x1x8x8xbf16> to vector<8x8x8xbf16>
    %36 = vector.shape_cast %35 : vector<8x8x8xbf16> to vector<64x8xbf16>
    %c2 = arith.constant 2 : index
    %c0_36 = arith.constant 0 : index
    %c0_37 = arith.constant 0 : index
    %37 = vector.load %arg5[%c2, %c0_36, %c0_37] : memref<3x8x4xbf16, #tpu.memory_space<vmem>>, vector<1x8x4xbf16>
    %38 = vector.shape_cast %37 : vector<1x8x4xbf16> to vector<8x4xbf16>
    %cst_38 = arith.constant dense<0.000000e+00> : vector<64x4xf32>
    %39 = tpu.matmul %36, %38, %cst_38 {dimension_numbers = #tpu.dot_dimension_numbers<[1], [0], [0], [1], [0, 0, 1, 1], [], []>} : vector<64x8xbf16>, vector<8x4xbf16>, vector<64x4xf32> -> vector<64x4xf32>
    %40 = arith.addf %33, %39 : vector<64x4xf32>
    %c1_39 = arith.constant 1 : index
    %c0_40 = arith.constant 0 : index
    %c1_41 = arith.constant 1 : index
    %c0_42 = arith.constant 0 : index
    %41 = vector.load %arg9[%c1_39, %c0_40, %c1_41, %c0_42] : memref<9x2x9x8xbf16, #tpu.memory_space<vmem>>, vector<8x1x8x4xbf16>
    %42 = vector.shape_cast %41 : vector<8x1x8x4xbf16> to vector<8x8x4xbf16>
    %43 = vector.shape_cast %42 : vector<8x8x4xbf16> to vector<64x4xbf16>
    %c2_43 = arith.constant 2 : index
    %c0_44 = arith.constant 0 : index
    %c0_45 = arith.constant 0 : index
    %44 = vector.load %arg6[%c2_43, %c0_44, %c0_45] : memref<3x4x4xbf16, #tpu.memory_space<vmem>>, vector<1x4x4xbf16>
    %45 = vector.shape_cast %44 : vector<1x4x4xbf16> to vector<4x4xbf16>
    %cst_46 = arith.constant dense<0.000000e+00> : vector<64x4xf32>
    %46 = tpu.matmul %43, %45, %cst_46 {dimension_numbers = #tpu.dot_dimension_numbers<[1], [0], [0], [1], [0, 0, 1, 1], [], []>} : vector<64x4xbf16>, vector<4x4xbf16>, vector<64x4xf32> -> vector<64x4xf32>
    %47 = arith.addf %40, %46 : vector<64x4xf32>
    %48 = vector.shape_cast %47 : vector<64x4xf32> to vector<8x8x4xf32>
    %c0_47 = arith.constant 0 : index
    %c0_48 = arith.constant 0 : index
    %c0_49 = arith.constant 0 : index
    %c0_50 = arith.constant 0 : index
    %49 = vector.load %arg8[%c0_47, %c0_48, %c0_49, %c0_50] : memref<1x8x8x4xf32, #tpu.memory_space<vmem>>, vector<1x8x8x4xf32>
    %50 = vector.shape_cast %49 : vector<1x8x8x4xf32> to vector<8x8x4xf32>
    %51 = vector.shape_cast %48 : vector<8x8x4xf32> to vector<1x8x8x4xf32>
    tpu.vector_store %arg8[%c0_47, %c0_48, %c0_49, %c0_50], %51 {strides = array<i32>} : memref<1x8x8x4xf32, #tpu.memory_space<vmem>>, vector<1x8x8x4xf32>,
    return
  }
  func.func @transform_0(%arg0: i32, %arg1: i32, %arg2: i32) -> (i32, i32, i32, i32) {
    %c0_i32 = arith.constant 0 : i32
    %c0_i32_0 = arith.constant 0 : i32
    %c0_i32_1 = arith.constant 0 : i32
    return %arg0, %arg1, %c0_i32, %c0_i32_0 : i32, i32, i32, i32
  }
  func.func @transform_1(%arg0: i32, %arg1: i32, %arg2: i32) -> (i32, i32, i32, i32) {
    %c1_i32 = arith.constant 1 : i32
    %0 = arith.addi %arg1, %c1_i32 : i32
    %c16_i32 = arith.constant 16 : i32
    %1 = arith.muli %c16_i32, %0 : i32
    %c0_i32 = arith.constant 0 : i32
    %c0_i32_0 = arith.constant 0 : i32
    %c0_i32_1 = arith.constant 0 : i32
    return %arg0, %1, %c0_i32, %c0_i32_0 : i32, i32, i32, i32
  }
  func.func @transform_2(%arg0: i32, %arg1: i32, %arg2: i32) -> (i32, i32, i32) {
    %c0_i32 = arith.constant 0 : i32
    %c0_i32_0 = arith.constant 0 : i32
    %c0_i32_1 = arith.constant 0 : i32
    return %c0_i32, %c0_i32_0, %arg2 : i32, i32, i32
  }
  func.func @transform_3(%arg0: i32, %arg1: i32, %arg2: i32) -> (i32, i32, i32) {
    %c0_i32 = arith.constant 0 : i32
    %c0_i32_0 = arith.constant 0 : i32
    %c0_i32_1 = arith.constant 0 : i32
    return %c0_i32, %c0_i32_0, %arg2 : i32, i32, i32
  }
  func.func @transform_4(%arg0: i32, %arg1: i32, %arg2: i32) -> (i32, i32) {
    %c0_i32 = arith.constant 0 : i32
    %c0_i32_0 = arith.constant 0 : i32
    return %c0_i32, %arg2 : i32, i32
  }
  func.func @transform_5(%arg0: i32, %arg1: i32, %arg2: i32) -> (i32, i32, i32, i32) {
    %c0_i32 = arith.constant 0 : i32
    %c0_i32_0 = arith.constant 0 : i32
    return %arg0, %arg1, %c0_i32, %arg2 : i32, i32, i32, i32
  }
}

</mosaic_0001>

<bundles_post_ra>
// kernel: downsample_conv2d.1
= control target key start
LH: loop header
LB: loop body
LE: loop exit
PB: predicated region body
PF: predicated region fallthrough
CT: control target
= control target key end

     0   :  { %s2060_s18 = smov 0   ;;  %s2062_s19 = smov 0   ;;  %s2338_s0 = inlined_call_operand.vmem [shape: bf16[2,18,9,8], index: 0, kind: input, shape index: {}, may-alias: {0,1}]   ;;  %s2339_s1 = inlined_call_operand.vmem [shape: bf16[2,18,9,8], index: 1, kind: input, shape index: {}, may-alias: {0,1}]   ;;  %s2340_s2 = inlined_call_operand.vmem [shape: bf16[3,8,4], index: 2, kind: input, shape index: {}]   ;;  %s2341_s3 = inlined_call_operand.vmem [shape: bf16[3,4,4], index: 3, kind: input, shape index: {}]   ;;  %s2342_s4 = inlined_call_operand.vmem [shape: f32[1,4], index: 4, kind: input, shape index: {}]   ;;  %s2343_s5 = inlined_call_operand.vmem [shape: f32[2,8,8,4], index: 5, kind: output, shape index: {}]  }
   0x1   :  { %s2064_s20 = smov 0  }
   0x2 LB: > { %s34_s21 = sadd.s32 1, %s2024_s19  ;;  %p1759_p0 = scmp.ge.s32.totalorder %s2028_s20, 1  ;;  %s2028_s20 = sphi %s2064_s20, %s15_s20   ;;  %s2024_s19 = sphi %s2062_s19, %s2349_s19   ;;  %s2020_s18 = sphi %s2060_s18, %s2348_s18  }
   0x3   : > { %p36_p1 = scmp.ge.s32.totalorder %s34_s21, 2  ;;  %p278_p2 = scmp.lt.s32.totalorder %s2028_s20, 3 }
   0x5   : > { %s2351_s21 = smov (%p36_p1, %s34_s21), 0  ;;  %p279_p3 = pnand %p1759_p0, %p278_p2 }
   0x6   : > { %v535_v0 = vld [vmem:[%s2340_s2] sm:$0xf] (!%p279_p3)  ;;  %vm569_vm0 = vcmask (!%p279_p3), 1043456   ;;  %p351_p4 = scmp.lt.s32.totalorder (!%p279_p3), %s2020_s18, 1  ;;  %vm440_vm1 = vcmask (!%p279_p3), 60416   ;;  %vm803_vm2 = vcmask (!%p279_p3), 1041408  }
   0x7   : > { %282 = sbr.rel (%p279_p3) target bundleno = 325 (0x145), region = 40  ;;  %1960 = vmatprep.subr.msk.bf16.mxu1 (!%p279_p3), %vm569_vm0, %v535_v0  ;;  %v571_v1 = vsel (!%p279_p3), %vm569_vm0, %v535_v0, 0  ;;  %v1790_v2 = vld [vmem:[%s2341_s3 + $0x2] sm:$0x3] (!%p279_p3)  ;;  %vm442_vm3 = vcmask (!%p279_p3), 57344   ;;  %vm556_vm6 = vcmask (!%p279_p3), 64512  }
   0x8   : > { %1853 = vmatpush3.bf16.msra.mxu1 (!%p279_p3), %v571_v1  ;;  %1963 = vmatprep.subr.msk.bf16.mxu0 (!%p279_p3), %vm803_vm2, %v1790_v2  ;;  %v1154_v3 = vsel (!%p279_p3), %vm803_vm2, %v1790_v2, 0  ;;  %v777_v4 = vld [vmem:[%s2341_s3] sm:$0x3] (!%p279_p3)  ;;  %vm443_vm4 = vsmask.f32 (!%p279_p3), 256  ;;  %vm790_vm9 = vcmask (!%p279_p3), 31744  }
   0x9   : > { %1883 = vmatpush3.bf16.msra.mxu0 (!%p279_p3), %v1154_v3  ;;  %1961 = vmatprep.subr.msk.bf16.mxu1 (!%p279_p3), %vm803_vm2, %v777_v4  ;;  %vm2095_vm5 = vmand (!%p279_p3), %vm442_vm3, %vm443_vm4  ;;  %v517_v6 = vld [vmem:[#allocation2 + $0x8c] sm:$0x1] (!%p279_p3)  ;;  %v2104_v8 = vld [vmem:[%s2340_s2 + $0x8] sm:$0xf] (!%p279_p3)  ;;  %v2114_v9 = vsel (!%p279_p3), %vm803_vm2, %v777_v4, 0 }
   0xa   : > { %v518_v7 = vsel (!%p279_p3), %vm2095_vm5, 0, %v517_v6  ;;  %v449_v10 = vld [vmem:[#allocation2 + $0xc] sm:$0x1] (!%p279_p3)  ;;  %v457_v11 = vld [vmem:[#allocation2 + $0x1c] sm:$0x1] (!%p279_p3)  ;;  %1964 = vmatprep.subr.msk.bf16.mxu0 (!%p279_p3), %vm569_vm0, %v2104_v8  ;;  %v2170_v49 = vsel (!%p279_p3), %vm569_vm0, %v2104_v8, 0 }
   0xb   : > { %519 = vst [vmem:[#allocation2 + $0x8c] sm:$0x1] (!%p279_p3), %v518_v7  ;;  %v465_v15 = vld [vmem:[#allocation2 + $0x2c] sm:$0x1] (!%p279_p3)  ;;  %v473_v19 = vld [vmem:[#allocation2 + $0x3c] sm:$0x1] (!%p279_p3) }
   0xc   : > { %v445_v36 = vld [vmem:[#allocation2 + $0x4] sm:$0x1] (!%p279_p3)  ;;  %v453_v37 = vld [vmem:[#allocation2 + $0x14] sm:$0x1] (!%p279_p3)  ;;  %vm662_vm7 = vsmask.f32 (!%p279_p3), 3328 }
   0xd   : > { %vm663_vm8 = vsmask.f32 (!%p279_p3), 7440  ;;  %v461_v42 = vld [vmem:[#allocation2 + $0x24] sm:$0x1] (!%p279_p3)  ;;  %v469_v43 = vld [vmem:[#allocation2 + $0x34] sm:$0x1] (!%p279_p3) }
   0xe   : > { %s2353_s18 = smov (!%p351_p4, %s2020_s18), 1  ;;  %vm2176_vm10 = vmor %vm662_vm7, %vm663_vm8 }
   0xf   : > { %s1966_s28 = smul.u32 144, %s2353_s18  ;;  %s1821_s23 = sshll.u32 %s2353_s18, 6 }
  0x10   : > { %s2311_s26 = scalar_lea.vmem %s2343_s5, %s1821_s23 }
  0x11   : > { %s2111_s8 = scalar_lea.vmem %s2338_s0, %s1966_s28  ;;  %s1820_s13 = sadd.s32 128, %s1966_s28 }
  0x12   : > { %v408_v12 = vld [vmem:[%s2111_s8] sm:$0xf]  ;;  %v412_v13 = vld [vmem:[%s2111_s8 + $0x10] sm:$0xf]  ;;  %v410_v22 = vld [vmem:[%s2111_s8 + $0x8] sm:$0xf]  ;;  %s376_s16 = scalar_lea.vmem %s2339_s1, %s1820_s13 }
  0x13   : > { %v416_v14 = vld [vmem:[%s2111_s8 + $0x20] sm:$0xf]  ;;  %441 = vst.msk [vmem:[#allocation2] sm:$0xf] %vm440_vm1, %v408_v12  ;;  %452 = vst.msk [vmem:[#allocation2 + $0x10] sm:$0xf] %vm440_vm1, %v412_v13 }
  0x14   : > { %v420_v16 = vld [vmem:[%s2111_s8 + $0x30] sm:$0xf]  ;;  %460 = vst.msk [vmem:[#allocation2 + $0x20] sm:$0xf] %vm440_vm1, %v416_v14  ;;  %v424_v17 = vld [vmem:[%s2111_s8 + $0x40] sm:$0xf] }
  0x15   : > { %v428_v18 = vld [vmem:[%s2111_s8 + $0x50] sm:$0xf]  ;;  %468 = vst.msk [vmem:[#allocation2 + $0x30] sm:$0xf] %vm440_vm1, %v420_v16  ;;  %476 = vst.msk [vmem:[#allocation2 + $0x40] sm:$0xf] %vm440_vm1, %v424_v17 }
  0x16   : > { %484 = vst.msk [vmem:[#allocation2 + $0x50] sm:$0xf] %vm440_vm1, %v428_v18  ;;  %v432_v20 = vld [vmem:[%s2111_s8 + $0x60] sm:$0xf]  ;;  %v436_v21 = vld [vmem:[%s2111_s8 + $0x70] sm:$0xf] }
  0x17   : > { %492 = vst.msk [vmem:[#allocation2 + $0x60] sm:$0xf] %vm440_vm1, %v432_v20  ;;  %500 = vst.msk [vmem:[#allocation2 + $0x70] sm:$0xf] %vm440_vm1, %v436_v21  ;;  %v411_v23 = vld [vmem:[%s2111_s8 + $0xc] sm:$0x1] }
  0x18   : > { %v414_v24 = vld [vmem:[%s2111_s8 + $0x18] sm:$0xf]  ;;  %v415_v25 = vld [vmem:[%s2111_s8 + $0x1c] sm:$0x1]  ;;  %448 = vst.msk [vmem:[#allocation2 + $0x8] sm:$0xf] %vm440_vm1, %v410_v22  ;;  %v450_v26 = vsel %vm2095_vm5, %v411_v23, %v449_v10 }
  0x19   : > { %456 = vst.msk [vmem:[#allocation2 + $0x18] sm:$0xf] %vm440_vm1, %v414_v24  ;;  %v458_v27 = vsel %vm2095_vm5, %v415_v25, %v457_v11  ;;  %v418_v28 = vld [vmem:[%s2111_s8 + $0x28] sm:$0xf]  ;;  %v419_v29 = vld [vmem:[%s2111_s8 + $0x2c] sm:$0x1] }
  0x1a   : > { %v422_v30 = vld [vmem:[%s2111_s8 + $0x38] sm:$0xf]  ;;  %451 = vst [vmem:[#allocation2 + $0xc] sm:$0x1] %v450_v26  ;;  %459 = vst [vmem:[#allocation2 + $0x1c] sm:$0x1] %v458_v27  ;;  %v466_v32 = vsel %vm2095_vm5, %v419_v29, %v465_v15 }
  0x1b   : > { %v423_v31 = vld [vmem:[%s2111_s8 + $0x3c] sm:$0x1]  ;;  %464 = vst.msk [vmem:[#allocation2 + $0x28] sm:$0xf] %vm440_vm1, %v418_v28  ;;  %472 = vst.msk [vmem:[#allocation2 + $0x38] sm:$0xf] %vm440_vm1, %v422_v30 }
  0x1c   : > { %v409_v33 = vld [vmem:[%s2111_s8 + $0x4] sm:$0x1]  ;;  %v413_v34 = vld [vmem:[%s2111_s8 + $0x14] sm:$0x1]  ;;  %467 = vst [vmem:[#allocation2 + $0x2c] sm:$0x1] %v466_v32  ;;  %v474_v35 = vsel %vm2095_vm5, %v423_v31, %v473_v19 }
  0x1d   : > { %v417_v38 = vld [vmem:[%s2111_s8 + $0x24] sm:$0x1]  ;;  %475 = vst [vmem:[#allocation2 + $0x3c] sm:$0x1] %v474_v35  ;;  %v446_v39 = vsel %vm2095_vm5, %v409_v33, %v445_v36  ;;  %v454_v40 = vsel %vm2095_vm5, %v413_v34, %v453_v37  ;;  %v421_v41 = vld [vmem:[%s2111_s8 + $0x34] sm:$0x1] }
  0x1e   : > { %v1994_v44 = vld [vmem:[#allocation2] ss:$16 sps:$4 sm:$0xff]   ;;  %447 = vst [vmem:[#allocation2 + $0x4] sm:$0x1] %v446_v39  ;;  %455 = vst [vmem:[#allocation2 + $0x14] sm:$0x1] %v454_v40  ;;  %v462_v45 = vsel %vm2095_vm5, %v417_v38, %v461_v42  ;;  %v470_v46 = vsel %vm2095_vm5, %v421_v41, %v469_v43 }
  0x1f   : > { %v1995_v47 = vld [vmem:[#allocation2 + $0x20] ss:$16 sps:$4 sm:$0xff]   ;;  %463 = vst [vmem:[#allocation2 + $0x24] sm:$0x1] %v462_v45  ;;  %471 = vst [vmem:[#allocation2 + $0x34] sm:$0x1] %v470_v46  ;;  %1854 = vmatprep.mubr.msk.bf16.mxu1 %vm556_vm6, %v1994_v44 }
  0x20   : > { %v1996_v48 = vld [vmem:[#allocation2 + $0x40] ss:$16 sps:$4 sm:$0xff]   ;;  %1855 = vmatmul.mubr.msk.bf16.vlgmr.msra.gmra.mrb[0].mxu1 %vm556_vm6, %v1995_v47  ;;  %v999_v50 = vld [vmem:[#allocation2 + $0x8] sm:$0xf]  ;;  %v1001_v52 = vld [vmem:[#allocation2 + $0x18] sm:$0xf] }
  0x21   : > { %1858 = vmatprep.mubr.msk.bf16.mxu1 %vm556_vm6, %v1996_v48  ;;  %1863 = vmatpush3.bf16.msra.mxu1 %v2114_v9  ;;  %v1000_v51 = vld [vmem:[#allocation2 + $0xc] sm:$0x1]  ;;  %v1997_v53 = vld [vmem:[#allocation2 + $0x60] ss:$16 sps:$4 sm:$0xff]   ;;  %v1002_v54 = vld [vmem:[#allocation2 + $0x1c] sm:$0x1] }
  0x22   : > { %v1016_v55 = vshrl.u32 %v999_v50, 16  ;;  %v1019_v56 = vshll.u32 %v999_v50, 16  ;;  %v1025_v57 = vshll.u32 %v1000_v51, 16  ;;  %v1030_v58 = vshrl.u32 %v1001_v52, 16  ;;  %v1003_v61 = vld [vmem:[#allocation2 + $0x28] sm:$0xf] }
  0x23   : > { %v1033_v59 = vshll.u32 %v1001_v52, 16  ;;  %v1039_v60 = vshll.u32 %v1002_v54, 16  ;;  %v1004_v62 = vld [vmem:[#allocation2 + $0x2c] sm:$0x1]  ;;  %v1005_v3 = vld [vmem:[#allocation2 + $0x38] sm:$0xf] }
  0x24   : > { %v1018_v63 = vrot.slane %v1016_v55, 4  ;;  %v1021_v0 = vrot.slane %v1019_v56, 5  ;;  %v1027_v1 = vrot.slane %v1025_v57, 5  ;;  %v1032_v2 = vrot.slane %v1030_v58, 4  ;;  %v1006_v7 = vld [vmem:[#allocation2 + $0x3c] sm:$0x1] }
  0x25   : > { %v1035_v4 = vrot.slane %v1033_v59, 5  ;;  %v1041_v6 = vrot.slane %v1039_v60, 5  ;;  %v1044_v8 = vshrl.u32 %v1003_v61, 16  ;;  %v1047_v9 = vshll.u32 %v1003_v61, 16  ;;  %v646_v14 = vld [vmem:[#allocation2] sm:$0xf] }
  0x26   : > { %v1022_v10 = vor.u32 %v1021_v0, %v1018_v63  ;;  %v1053_v11 = vshll.u32 %v1004_v62, 16  ;;  %v1058_v12 = vshrl.u32 %v1005_v3, 16  ;;  %v1061_v13 = vshll.u32 %v1005_v3, 16  ;;  %v647_v20 = vld [vmem:[#allocation2 + $0x4] sm:$0x1] }
  0x27   : > { %v1036_v16 = vor.u32 %v1035_v4, %v1032_v2  ;;  %v1046_v17 = vrot.slane %v1044_v8, 4  ;;  %v1049_v18 = vrot.slane %v1047_v9, 5  ;;  %v1067_v19 = vshll.u32 %v1006_v7, 16  ;;  %v648_v25 = vld [vmem:[#allocation2 + $0x10] sm:$0xf] }
  0x28   : > { %1859 = vmatmul.mubr.msk.bf16.gmra.mrb[4].mxu1 %vm556_vm6, %v1997_v53  ;;  %v1023_v21 = vrot.slane %v1022_v10, 4  ;;  %v1055_v22 = vrot.slane %v1053_v11, 5  ;;  %v1060_v23 = vrot.slane %v1058_v12, 4  ;;  %v1063_v24 = vrot.slane %v1061_v13, 5  ;;  %v649_v32 = vld [vmem:[#allocation2 + $0x14] sm:$0x1] }
  0x29   : > { %v1037_v26 = vrot.slane %v1036_v16, 4  ;;  %v1050_v27 = vor.u32 %v1049_v18, %v1046_v17  ;;  %v1069_v28 = vrot.slane %v1067_v19, 5  ;;  %v666_v29 = vshrl.u32 %v646_v14, 16  ;;  %v650_v35 = vld [vmem:[#allocation2 + $0x20] sm:$0xf] }
  0x2a   : > { %v1028_v30 = vsel %vm2176_vm10, %v1023_v21, %v1027_v1  ;;  %v1064_v31 = vor.u32 %v1063_v24, %v1060_v23  ;;  %v669_v33 = vshll.u32 %v646_v14, 16  ;;  %v675_v34 = vshll.u32 %v647_v20, 16  ;;  %v651_v40 = vld [vmem:[#allocation2 + $0x24] sm:$0x1]  ;;  %v652_v45 = vld [vmem:[#allocation2 + $0x30] sm:$0xf] }
  0x2b   : > { %v1042_v36 = vsel %vm2176_vm10, %v1037_v26, %v1041_v6  ;;  %v1051_v37 = vrot.slane %v1050_v27, 4  ;;  %v668_v38 = vrot.slane %v666_v29, 4  ;;  %v680_v39 = vshrl.u32 %v648_v25, 16  ;;  %v426_v51 = vld [vmem:[%s2111_s8 + $0x48] sm:$0xf] }
  0x2c   : > { %v1791_v41 = vcombine.low %v1028_v30, %v1042_v36  ;;  %v1065_v42 = vrot.slane %v1064_v31, 4  ;;  %v671_v43 = vrot.slane %v669_v33, 5  ;;  %v677_v44 = vrot.slane %v675_v34, 5  ;;  %v653_v54 = vld [vmem:[#allocation2 + $0x34] sm:$0x1] }
  0x2d   : > { %v1056_v46 = vsel %vm2176_vm10, %v1051_v37, %v1055_v22  ;;  %v682_v47 = vrot.slane %v680_v39, 4  ;;  %v683_v48 = vshll.u32 %v648_v25, 16  ;;  %v689_v50 = vshll.u32 %v649_v32, 16  ;;  %v430_v57 = vld [vmem:[%s2111_s8 + $0x58] sm:$0xf] }
  0x2e   : > { %1884 = vmatprep.mubr.msk.bf16.mxu0 %vm790_vm9, %v1791_v41  ;;  %v1070_v52 = vsel %vm2176_vm10, %v1065_v42, %v1069_v28  ;;  %v672_v53 = vor.u32 %v671_v43, %v668_v38  ;;  %v694_v55 = vshrl.u32 %v650_v35, 16  ;;  %v697_v56 = vshll.u32 %v650_v35, 16  ;;  %480 = vst.msk [vmem:[#allocation2 + $0x48] sm:$0xf] %vm440_vm1, %v426_v51  ;;  %v427_v61 = vld [vmem:[%s2111_s8 + $0x4c] sm:$0x1] }
  0x2f   : > { %v1792_v58 = vcombine.low %v1056_v46, %v1070_v52  ;;  %v685_v59 = vrot.slane %v683_v48, 5  ;;  %v703_v60 = vshll.u32 %v651_v40, 16  ;;  %v431_v62 = vld [vmem:[%s2111_s8 + $0x5c] sm:$0x1]  ;;  %488 = vst.msk [vmem:[#allocation2 + $0x58] sm:$0xf] %vm440_vm1, %v430_v57 }
  0x30   : > { %v673_v63 = vrot.slane %v672_v53, 4  ;;  %v696_v0 = vrot.slane %v694_v55, 4  ;;  %v699_v1 = vrot.slane %v697_v56, 5  ;;  %v708_v2 = vshrl.u32 %v652_v45, 16  ;;  %v481_v3 = vld [vmem:[#allocation2 + $0x4c] sm:$0x1] }
  0x31   : > { %1885 = vmatmul.mubr.msk.bf16.vlgmr.msra.gmra.mrb[0].mxu0 %vm790_vm9, %v1792_v58  ;;  %v686_v4 = vor.u32 %v685_v59, %v682_v47  ;;  %v691_v6 = vrot.slane %v689_v50, 5  ;;  %v711_v7 = vshll.u32 %v652_v45, 16  ;;  %v717_v8 = vshll.u32 %v653_v54, 16  ;;  %v489_v9 = vld [vmem:[#allocation2 + $0x5c] sm:$0x1] }
  0x32   : > { %1893 = vmatpush3.bf16.msra.mxu0 %v2170_v49  ;;  %v700_v10 = vor.u32 %v699_v1, %v696_v0  ;;  %v705_v11 = vrot.slane %v703_v60, 5  ;;  %v710_v12 = vrot.slane %v708_v2, 4  ;;  %v482_v13 = vsel %vm2095_vm5, %v427_v61, %v481_v3  ;;  %v434_v14 = vld [vmem:[%s2111_s8 + $0x68] sm:$0xf]  ;;  %v435_v16 = vld [vmem:[%s2111_s8 + $0x6c] sm:$0x1] }
  0x33   : > { %v678_v17 = vsel %vm2176_vm10, %v673_v63, %v677_v44  ;;  %v687_v18 = vrot.slane %v686_v4, 4  ;;  %v713_v19 = vrot.slane %v711_v7, 5  ;;  %483 = vst [vmem:[#allocation2 + $0x4c] sm:$0x1] %v482_v13  ;;  %v490_v20 = vsel %vm2095_vm5, %v431_v62, %v489_v9  ;;  %v438_v21 = vld [vmem:[%s2111_s8 + $0x78] sm:$0xf] }
  0x34   : > { %496 = vst.msk [vmem:[#allocation2 + $0x68] sm:$0xf] %vm440_vm1, %v434_v14  ;;  %v701_v49 = vrot.slane %v700_v10, 4  ;;  %v719_v22 = vrot.slane %v717_v8, 5  ;;  %491 = vst [vmem:[#allocation2 + $0x5c] sm:$0x1] %v490_v20 }
  0x35   : > { %v439_v23 = vld [vmem:[%s2111_s8 + $0x7c] sm:$0x1]  ;;  %v497_v24 = vld [vmem:[#allocation2 + $0x6c] sm:$0x1]  ;;  %504 = vst.msk [vmem:[#allocation2 + $0x78] sm:$0xf] %vm440_vm1, %v438_v21  ;;  %v692_v25 = vsel %vm2176_vm10, %v687_v18, %v691_v6  ;;  %v714_v26 = vor.u32 %v713_v19, %v710_v12 }
  0x36   : > { %v1007_v27 = vld [vmem:[#allocation2 + $0x48] sm:$0xf]  ;;  %v498_v28 = vsel %vm2095_vm5, %v435_v16, %v497_v24  ;;  %v505_v29 = vld [vmem:[#allocation2 + $0x7c] sm:$0x1]  ;;  %v2217_v30 = vld [vmem:[%s2340_s2 + $0x4] sm:$0xf]  ;;  %v1773_v31 = vcombine.low %v678_v17, %v692_v25  ;;  %v706_v32 = vsel %vm2176_vm10, %v701_v49, %v705_v11 }
  0x37   : > { %v1009_v33 = vld [vmem:[#allocation2 + $0x58] sm:$0xf]  ;;  %v1072_v34 = vshrl.u32 %v1007_v27, 16  ;;  %v1075_v35 = vshll.u32 %v1007_v27, 16  ;;  %499 = vst [vmem:[#allocation2 + $0x6c] sm:$0x1] %v498_v28  ;;  %1962 = vmatprep.subr.msk.bf16.mxu1 %vm569_vm0, %v2217_v30  ;;  %v506_v40 = vsel %vm2095_vm5, %v439_v23, %v505_v29 }
  0x38   : > { %v425_v36 = vld [vmem:[%s2111_s8 + $0x44] sm:$0x1]  ;;  %v715_v37 = vrot.slane %v714_v26, 4  ;;  %v1086_v38 = vshrl.u32 %v1009_v33, 16  ;;  %v1089_v39 = vshll.u32 %v1009_v33, 16  ;;  %1864 = vmatprep.mubr.msk.bf16.mxu1 %vm790_vm9, %v1773_v31 }
  0x39   : > { %v429_v41 = vld [vmem:[%s2111_s8 + $0x54] sm:$0x1]  ;;  %v1074_v42 = vrot.slane %v1072_v34, 4  ;;  %v1077_v43 = vrot.slane %v1075_v35, 5  ;;  %507 = vst [vmem:[#allocation2 + $0x7c] sm:$0x1] %v506_v40 }
  0x3a   : > { %v477_v44 = vld [vmem:[#allocation2 + $0x44] sm:$0x1]  ;;  %v485_v45 = vld [vmem:[#allocation2 + $0x54] sm:$0x1]  ;;  %v720_v46 = vsel %vm2176_vm10, %v715_v37, %v719_v22  ;;  %v1088_v47 = vrot.slane %v1086_v38, 4  ;;  %v1091_v48 = vrot.slane %v1089_v39, 5 }
  0x3b   : > { %v478_v50 = vsel %vm2095_vm5, %v425_v36, %v477_v44  ;;  %v654_v51 = vld [vmem:[#allocation2 + $0x40] sm:$0xf]  ;;  %v1774_v52 = vcombine.low %v706_v32, %v720_v46  ;;  %v1008_v53 = vld [vmem:[#allocation2 + $0x4c] sm:$0x1]  ;;  %v1078_v54 = vor.u32 %v1077_v43, %v1074_v42  ;;  %v1011_v55 = vld [vmem:[#allocation2 + $0x68] sm:$0xf]  ;;  %v486_v56 = vsel %vm2095_vm5, %v429_v41, %v485_v45 }
  0x3c   : > { %479 = vst [vmem:[#allocation2 + $0x44] sm:$0x1] %v478_v50  ;;  %v722_v57 = vshrl.u32 %v654_v51, 16  ;;  %v1010_v58 = vld [vmem:[#allocation2 + $0x5c] sm:$0x1]  ;;  %v1081_v59 = vshll.u32 %v1008_v53, 16  ;;  %v1092_v60 = vor.u32 %v1091_v48, %v1088_v47 }
  0x3d   : > { %v1013_v61 = vld [vmem:[#allocation2 + $0x78] sm:$0xf]  ;;  %v1100_v62 = vshrl.u32 %v1011_v55, 16  ;;  %487 = vst [vmem:[#allocation2 + $0x54] sm:$0x1] %v486_v56  ;;  %1865 = vmatmul.mubr.msk.bf16.vlgmr.msra.gmra.mrb[0].mxu1 %vm790_vm9, %v1774_v52  ;;  %v1079_v63 = vrot.slane %v1078_v54, 4 }
  0x3e   : > { %v1095_v0 = vshll.u32 %v1010_v58, 16  ;;  %v1103_v1 = vshll.u32 %v1011_v55, 16  ;;  %v1114_v2 = vshrl.u32 %v1013_v61, 16  ;;  %v1083_v3 = vrot.slane %v1081_v59, 5  ;;  %v1012_v6 = vld [vmem:[#allocation2 + $0x6c] sm:$0x1] }
  0x3f   : > { %v1093_v4 = vrot.slane %v1092_v60, 4  ;;  %v1102_v7 = vrot.slane %v1100_v62, 4  ;;  %v1117_v8 = vshll.u32 %v1013_v61, 16  ;;  %v1109_v11 = vshll.u32 %v1012_v6, 16  ;;  %v656_v13 = vld [vmem:[#allocation2 + $0x50] sm:$0xf] }
  0x40   : > { %v1097_v9 = vrot.slane %v1095_v0, 5  ;;  %v1105_v10 = vrot.slane %v1103_v1, 5  ;;  %v1116_v12 = vrot.slane %v1114_v2, 4  ;;  %v1084_v14 = vsel %vm2176_vm10, %v1079_v63, %v1083_v3  ;;  %v1014_v16 = vld [vmem:[#allocation2 + $0x7c] sm:$0x1] }
  0x41   : > { %v1119_v17 = vrot.slane %v1117_v8, 5  ;;  %v724_v18 = vrot.slane %v722_v57, 4  ;;  %v725_v19 = vshll.u32 %v654_v51, 16  ;;  %v1111_v49 = vrot.slane %v1109_v11, 5  ;;  %v433_v23 = vld [vmem:[%s2111_s8 + $0x64] sm:$0x1] }
  0x42   : > { %v1098_v20 = vsel %vm2176_vm10, %v1093_v4, %v1097_v9  ;;  %v1106_v21 = vor.u32 %v1105_v10, %v1102_v7  ;;  %v1123_v22 = vshll.u32 %v1014_v16, 16  ;;  %v493_v24 = vld [vmem:[#allocation2 + $0x64] sm:$0x1]  ;;  %v736_v29 = vshrl.u32 %v656_v13, 16  ;;  %v437_v31 = vld [vmem:[%s2111_s8 + $0x74] sm:$0x1] }
  0x43   : > { %v1793_v25 = vcombine.low %v1084_v14, %v1098_v20  ;;  %v1120_v26 = vor.u32 %v1119_v17, %v1116_v12  ;;  %v655_v27 = vld [vmem:[#allocation2 + $0x44] sm:$0x1]  ;;  %v727_v28 = vrot.slane %v725_v19, 5  ;;  %v501_v32 = vld [vmem:[#allocation2 + $0x74] sm:$0x1]  ;;  %v739_v38 = vshll.u32 %v656_v13, 16 }
  0x44   : > { %v658_v33 = vld [vmem:[#allocation2 + $0x60] sm:$0xf]  ;;  %v1107_v34 = vrot.slane %v1106_v21, 4  ;;  %v1125_v35 = vrot.slane %v1123_v22, 5  ;;  %v657_v36 = vld [vmem:[#allocation2 + $0x54] sm:$0x1]  ;;  %v494_v52 = vsel %vm2095_vm5, %v433_v23, %v493_v24  ;;  %v502_v56 = vsel %vm2095_vm5, %v437_v31, %v501_v32 }
  0x45   : > { %v731_v37 = vshll.u32 %v655_v27, 16  ;;  %1888 = vmatprep.mubr.msk.bf16.mxu0 %vm790_vm9, %v1793_v25  ;;  %v1121_v39 = vrot.slane %v1120_v26, 4  ;;  %v728_v40 = vor.u32 %v727_v28, %v724_v18  ;;  %v738_v41 = vrot.slane %v736_v29, 4  ;;  %v660_v43 = vld [vmem:[#allocation2 + $0x70] sm:$0xf] }
  0x46   : > { %v745_v42 = vshll.u32 %v657_v36, 16  ;;  %v1112_v44 = vsel %vm2176_vm10, %v1107_v34, %v1111_v49  ;;  %v741_v46 = vrot.slane %v739_v38, 5  ;;  %v924_v47 = vsel %vm569_vm0, %v2217_v30, 0  ;;  %v1998_v53 = vld [vmem:[#allocation2 + $0x10] ss:$16 sps:$4 sm:$0xff]  }
  0x47   : > { %v733_v45 = vrot.slane %v731_v37, 5  ;;  %v1126_v48 = vsel %vm2176_vm10, %v1121_v39, %v1125_v35  ;;  %v729_v50 = vrot.slane %v728_v40, 4  ;;  %1873 = vmatpush3.bf16.msra.mxu1 %v924_v47  ;;  %495 = vst [vmem:[#allocation2 + $0x64] sm:$0x1] %v494_v52  ;;  %v750_v57 = vshrl.u32 %v658_v33, 16 }
  0x48   : > { %v747_v51 = vrot.slane %v745_v42, 5  ;;  %v1794_v54 = vcombine.low %v1112_v44, %v1126_v48  ;;  %v742_v55 = vor.u32 %v741_v46, %v738_v41  ;;  %v1808_v30 = vld [vmem:[%s2341_s3 + $0x4] sm:$0x3]  ;;  %503 = vst [vmem:[#allocation2 + $0x74] sm:$0x1] %v502_v56  ;;  %v753_v58 = vshll.u32 %v658_v33, 16 }
  0x49   : > { %v764_v59 = vshrl.u32 %v660_v43, 16  ;;  %v767_v60 = vshll.u32 %v660_v43, 16  ;;  %1965 = vmatprep.subr.msk.bf16.mxu0 %vm803_vm2, %v1808_v30  ;;  %v734_v61 = vsel %vm2176_vm10, %v729_v50, %v733_v45  ;;  %v752_v63 = vrot.slane %v750_v57, 4  ;;  %v1999_v8 = vld [vmem:[#allocation2 + $0x30] ss:$16 sps:$4 sm:$0xff]  }
  0x4a   : > { %1889 = vmatmul.mubr.msk.bf16.gmra.mrb[4].mxu0 %vm790_vm9, %v1794_v54  ;;  %v743_v62 = vrot.slane %v742_v55, 4  ;;  %v755_v0 = vrot.slane %v753_v58, 5  ;;  %v1503_v9 = vsel %vm803_vm2, %v1808_v30, 0  ;;  %v508_v10 = vld [vmem:[%s376_s16] sm:$0xf] }
  0x4b   : > { %v766_v1 = vrot.slane %v764_v59, 4  ;;  %v769_v2 = vrot.slane %v767_v60, 5  ;;  %1894 = vmatprep.mubr.msk.bf16.mxu0 %vm556_vm6, %v1998_v53  ;;  %v2002_v12 = vld [vmem:[#allocation2 + $0x50] ss:$16 sps:$4 sm:$0xff]   ;;  %v509_v13 = vld [vmem:[%s376_s16 + $0x4] sm:$0x1] }
  0x4c   : > { %v748_v3 = vsel %vm2176_vm10, %v743_v62, %v747_v51  ;;  %v756_v6 = vor.u32 %v755_v0, %v752_v63  ;;  %511 = vst.msk [vmem:[#allocation2 + $0x80] sm:$0xf] %vm440_vm1, %v508_v10  ;;  %v512_v18 = vld [vmem:[#allocation2 + $0x84] sm:$0x1]  ;;  %v2000_v24 = vld [vmem:[#allocation2 + $0x8] ss:$16 sps:$4 sm:$0xff]  }
  0x4d   : > { %v1775_v4 = vcombine.low %v734_v61, %v748_v3  ;;  %v770_v7 = vor.u32 %v769_v2, %v766_v1  ;;  %v513_v21 = vsel %vm2095_vm5, %v509_v13, %v512_v18  ;;  %v1348_v25 = vld [vmem:[#allocation2 + $0x10] sm:$0xf]  ;;  %v1349_v26 = vld [vmem:[#allocation2 + $0x14] sm:$0x1]  ;;  %v1350_v28 = vld [vmem:[#allocation2 + $0x20] sm:$0xf] }
  0x4e   : > { %v659_v11 = vld [vmem:[#allocation2 + $0x64] sm:$0x1]  ;;  %v757_v16 = vrot.slane %v756_v6, 4  ;;  %514 = vst [vmem:[#allocation2 + $0x84] sm:$0x1] %v513_v21  ;;  %v1365_v29 = vshrl.u32 %v1348_v25, 16 }
  0x4f   : > { %1868 = vmatprep.mubr.msk.bf16.mxu1 %vm790_vm9, %v1775_v4  ;;  %v661_v14 = vld [vmem:[#allocation2 + $0x74] sm:$0x1]  ;;  %v759_v17 = vshll.u32 %v659_v11, 16  ;;  %v771_v19 = vrot.slane %v770_v7, 4  ;;  %v1351_v5 = vld [vmem:[#allocation2 + $0x24] sm:$0x1] }
  0x50   : > { %v773_v20 = vshll.u32 %v661_v14, 16  ;;  %v1368_v31 = vshll.u32 %v1348_v25, 16  ;;  %v1374_v34 = vshll.u32 %v1349_v26, 16  ;;  %v1379_v35 = vshrl.u32 %v1350_v28, 16  ;;  %v1352_v40 = vld [vmem:[#allocation2 + $0x30] sm:$0xf] }
  0x51   : > { %v761_v49 = vrot.slane %v759_v17, 5  ;;  %v1367_v36 = vrot.slane %v1365_v29, 4  ;;  %v1382_v38 = vshll.u32 %v1350_v28, 16  ;;  %v1388_v39 = vshll.u32 %v1351_v5, 16  ;;  %v1353_v43 = vld [vmem:[#allocation2 + $0x34] sm:$0x1] }
  0x52   : > { %1895 = vmatmul.mubr.msk.bf16.vlgmr.msra.gmra.mrb[0].mxu0 %vm556_vm6, %v1999_v8  ;;  %v775_v22 = vrot.slane %v773_v20, 5  ;;  %v1370_v37 = vrot.slane %v1368_v31, 5  ;;  %v1376_v41 = vrot.slane %v1374_v34, 5  ;;  %v1381_v42 = vrot.slane %v1379_v35, 4  ;;  %v1354_v44 = vld [vmem:[#allocation2 + $0x40] sm:$0xf] }
  0x53   : > { %1903 = vmatpush3.bf16.msra.mxu0 %v1503_v9  ;;  %1898 = vmatprep.mubr.msk.bf16.mxu0 %vm556_vm6, %v2002_v12  ;;  %v762_v23 = vsel %vm2176_vm10, %v757_v16, %v761_v49  ;;  %v2003_v33 = vld [vmem:[#allocation2 + $0x70] ss:$16 sps:$4 sm:$0xff]   ;;  %v1384_v46 = vrot.slane %v1382_v38, 5  ;;  %v1390_v47 = vrot.slane %v1388_v39, 5  ;;  %v1355_v48 = vld [vmem:[#allocation2 + $0x44] sm:$0x1] }
  0x54   : > { %v776_v27 = vsel %vm2176_vm10, %v771_v19, %v775_v22  ;;  %v1371_v45 = vor.u32 %v1370_v37, %v1367_v36  ;;  %v1393_v50 = vshrl.u32 %v1352_v40, 16  ;;  %v2001_v51 = vld [vmem:[#allocation2 + $0x28] ss:$16 sps:$4 sm:$0xff]   ;;  %v1396_v52 = vshll.u32 %v1352_v40, 16  ;;  %v1356_v56 = vld [vmem:[#allocation2 + $0x50] sm:$0xf] }
  0x55   : > { %v1776_v32 = vcombine.low %v762_v23, %v776_v27  ;;  %v1402_v53 = vshll.u32 %v1353_v43, 16  ;;  %v1407_v54 = vshrl.u32 %v1354_v44, 16  ;;  %v1410_v55 = vshll.u32 %v1354_v44, 16  ;;  %v1357_v60 = vld [vmem:[#allocation2 + $0x54] sm:$0x1] }
  0x56   : > { %v1372_v57 = vrot.slane %v1371_v45, 4  ;;  %v1385_v30 = vor.u32 %v1384_v46, %v1381_v42  ;;  %v1395_v58 = vrot.slane %v1393_v50, 4  ;;  %v1416_v59 = vshll.u32 %v1355_v48, 16  ;;  %v1358_v1 = vld [vmem:[#allocation2 + $0x60] sm:$0xf] }
  0x57   : > { %1869 = vmatmul.mubr.msk.bf16.gmra.mrb[4].mxu1 %vm790_vm9, %v1776_v32  ;;  %v1398_v61 = vrot.slane %v1396_v52, 5  ;;  %v1404_v62 = vrot.slane %v1402_v53, 5  ;;  %v1409_v63 = vrot.slane %v1407_v54, 4  ;;  %v1412_v0 = vrot.slane %v1410_v55, 5  ;;  %v2004_v2 = vld [vmem:[#allocation2 + $0x48] ss:$16 sps:$4 sm:$0xff]  }
  0x58   : > { %1874 = vmatprep.mubr.msk.bf16.mxu1 %vm556_vm6, %v2000_v24  ;;  %v1377_v3 = vsel %vm2176_vm10, %v1372_v57, %v1376_v41  ;;  %v1386_v4 = vrot.slane %v1385_v30, 4  ;;  %v1418_v6 = vrot.slane %v1416_v59, 5  ;;  %v1421_v7 = vshrl.u32 %v1356_v56, 16  ;;  %v1359_v10 = vld [vmem:[#allocation2 + $0x64] sm:$0x1] }
  0x59   : > { %v1399_v8 = vor.u32 %v1398_v61, %v1395_v58  ;;  %v1413_v9 = vor.u32 %v1412_v0, %v1409_v63  ;;  %v1424_v11 = vshll.u32 %v1356_v56, 16  ;;  %v1430_v12 = vshll.u32 %v1357_v60, 16  ;;  %v1360_v18 = vld [vmem:[#allocation2 + $0x70] sm:$0xf]  ;;  %v1361_v22 = vld [vmem:[#allocation2 + $0x74] sm:$0x1] }
  0x5a   : > { %1899 = vmatmul.mubr.msk.bf16.gmra.mrb[4].mxu0 %vm556_vm6, %v2003_v33  ;;  %v1391_v13 = vsel %vm2176_vm10, %v1386_v4, %v1390_v47  ;;  %v1423_v14 = vrot.slane %v1421_v7, 4  ;;  %v1435_v16 = vshrl.u32 %v1358_v1, 16  ;;  %v1438_v17 = vshll.u32 %v1358_v1, 16  ;;  %v1362_v27 = vld [vmem:[#allocation2 + $0x80] sm:$0xf] }
  0x5b   : > { %v1809_v19 = vcombine.low %v1377_v3, %v1391_v13  ;;  %v1400_v20 = vrot.slane %v1399_v8, 4  ;;  %v1414_v21 = vrot.slane %v1413_v9, 4  ;;  %v1426_v49 = vrot.slane %v1424_v11, 5  ;;  %v1363_v31 = vld [vmem:[#allocation2 + $0x84] sm:$0x1] }
  0x5c   : > { %v1432_v23 = vrot.slane %v1430_v12, 5  ;;  %v1437_v24 = vrot.slane %v1435_v16, 4  ;;  %v1440_v25 = vrot.slane %v1438_v17, 5  ;;  %v1444_v26 = vshll.u32 %v1359_v10, 16  ;;  %v2005_v37 = vld [vmem:[#allocation2 + $0x68] ss:$16 sps:$4 sm:$0xff]  }
  0x5d   : > { %1904 = vmatprep.mubr.msk.bf16.mxu0 %vm790_vm9, %v1809_v19  ;;  %v1405_v28 = vsel %vm2176_vm10, %v1400_v20, %v1404_v62  ;;  %v1419_v5 = vsel %vm2176_vm10, %v1414_v21, %v1418_v6  ;;  %v1427_v29 = vor.u32 %v1426_v49, %v1423_v14  ;;  %v1449_v32 = vshrl.u32 %v1360_v18, 16  ;;  %v1764_v61 = vld [vmem:[%s2342_s4] ss:$0 sm:$0xff] }
  0x5e   : > { %v1810_v33 = vcombine.low %v1405_v28, %v1419_v5  ;;  %v1441_v34 = vor.u32 %v1440_v25, %v1437_v24  ;;  %v1446_v35 = vrot.slane %v1444_v26, 5  ;;  %v1452_v36 = vshll.u32 %v1360_v18, 16 }
  0x5f   : > { %1875 = vmatmul.mubr.msk.bf16.vlgmr.msra.gmra.mrb[0].mxu1 %vm556_vm6, %v2001_v51  ;;  %v1428_v38 = vrot.slane %v1427_v29, 4  ;;  %v1451_v39 = vrot.slane %v1449_v32, 4  ;;  %v1458_v40 = vshll.u32 %v1361_v22, 16  ;;  %v1463_v41 = vshrl.u32 %v1362_v27, 16 }
  0x60   : > { %1878 = vmatprep.mubr.msk.bf16.mxu1 %vm556_vm6, %v2004_v2  ;;  %v1442_v42 = vrot.slane %v1441_v34, 4  ;;  %v1454_v43 = vrot.slane %v1452_v36, 5  ;;  %v1466_v44 = vshll.u32 %v1362_v27, 16  ;;  %v1472_v45 = vshll.u32 %v1363_v31, 16 }
  0x61   : > { %v1433_v46 = vsel %vm2176_vm10, %v1428_v38, %v1432_v23  ;;  %v1465_v47 = vrot.slane %v1463_v41, 4  ;;  %v1460_v51 = vrot.slane %v1458_v40, 5 }
  0x62   : > { %1905 = vmatmul.mubr.msk.bf16.vlgmr.msra.gmra.mrb[0].mxu0 %vm790_vm9, %v1810_v33  ;;  %v1447_v48 = vsel %vm2176_vm10, %v1442_v42, %v1446_v35  ;;  %v1455_v50 = vor.u32 %v1454_v43, %v1451_v39  ;;  %v1468_v52 = vrot.slane %v1466_v44, 5  ;;  %v1474_v56 = vrot.slane %v1472_v45, 5 }
  0x63   : > { %v1811_v53 = vcombine.low %v1433_v46, %v1447_v48 }
  0x64   : > { %v1456_v54 = vrot.slane %v1455_v50, 4  ;;  %v1469_v55 = vor.u32 %v1468_v52, %v1465_v47 }
  0x65   : > { %1908 = vmatprep.mubr.msk.bf16.mxu0 %vm790_vm9, %v1811_v53 }
  0x66   : > { %v1461_v57 = vsel %vm2176_vm10, %v1456_v54, %v1460_v51  ;;  %v1470_v30 = vrot.slane %v1469_v55, 4 }
  0x67   : > { %1879 = vmatmul.mubr.msk.bf16.gmra.mrb[4].mxu1 %vm556_vm6, %v2005_v37 }
  0x68   : > { %v1475_v58 = vsel %vm2176_vm10, %v1470_v30, %v1474_v56 }
  0x69   : > { %v1812_v59 = vcombine.low %v1461_v57, %v1475_v58 }
  0x6b   : > { %1909 = vmatmul.mubr.msk.bf16.gmra.mrb[4].mxu0 %vm790_vm9, %v1812_v59 }
 0x132   : > { %v1876_v60 = vpop.f32.mrb[0].mxu1 }
 0x133   : > { %v960_v62 = vpop.f32.mrb[1].mxu1  ;;  %v1912_v1 = vadd.f32 %v1876_v60, %v1764_v61 }
 0x134   : > { %v1877_v63 = vpop.f32.mrb[2].mxu1  ;;  %v1914_v2 = vadd.f32 %v1764_v61, %v960_v62 }
 0x135   : > { %v963_v0 = vpop.f32.mrb[3].mxu1  ;;  %v1906_v15 = vpop.f32.mrb[0].mxu0  ;;  %v1916_v3 = vadd.f32 %v1877_v63, %v1764_v61 }
 0x136   : > { %v1913_v4 = vadd.f32 %v1912_v1, %v1906_v15  ;;  %v1539_v6 = vpop.f32.mrb[1].mxu0  ;;  %v1918_v7 = vadd.f32 %v1764_v61, %v963_v0 }
 0x137   : > { %v1915_v8 = vadd.f32 %v1914_v2, %v1539_v6  ;;  %v1907_v9 = vpop.f32.mrb[2].mxu0 }
 0x138   : > { %1580 = vst.msk [vmem:[%s2311_s26 + $0x10] sm:$0xff] %vm790_vm9, %v1913_v4  ;;  %v1917_v11 = vadd.f32 %v1916_v3, %v1907_v9  ;;  %v1542_v12 = vpop.f32.mrb[3].mxu0 }
 0x139   : > { %1578 = vst.msk [vmem:[%s2311_s26] sm:$0xff] %vm790_vm9, %v1915_v8  ;;  %v1919_v14 = vadd.f32 %v1918_v7, %v1542_v12 }
 0x13a   : > { %v1880_v10 = vpop.f32.mrb[4].mxu1  ;;  %1581 = vst.msk [vmem:[%s2311_s26 + $0x18] sm:$0xff] %vm790_vm9, %v1917_v11 }
 0x13b   : > { %v976_v13 = vpop.f32.mrb[5].mxu1  ;;  %1579 = vst.msk [vmem:[%s2311_s26 + $0x8] sm:$0xff] %vm790_vm9, %v1919_v14  ;;  %v1920_v18 = vadd.f32 %v1880_v10, %v1764_v61 }
 0x13c   : > { %v1881_v16 = vpop.f32.mrb[6].mxu1  ;;  %v1922_v19 = vadd.f32 %v1764_v61, %v976_v13 }
 0x13d   : > { %v979_v17 = vpop.f32.mrb[7].mxu1  ;;  %v1924_v21 = vadd.f32 %v1881_v16, %v1764_v61 }
 0x13e   : > { %v1910_v20 = vpop.f32.mrb[4].mxu0  ;;  %v1926_v23 = vadd.f32 %v1764_v61, %v979_v17 }
 0x13f   : > { %v1921_v49 = vadd.f32 %v1920_v18, %v1910_v20  ;;  %v1555_v22 = vpop.f32.mrb[5].mxu0 }
 0x140   : > { %v1923_v24 = vadd.f32 %v1922_v19, %v1555_v22  ;;  %v1911_v25 = vpop.f32.mrb[6].mxu0 }
 0x141   : > { %1584 = vst.msk [vmem:[%s2311_s26 + $0x30] sm:$0xff] %vm790_vm9, %v1921_v49  ;;  %v1925_v26 = vadd.f32 %v1924_v21, %v1911_v25  ;;  %v1558_v27 = vpop.f32.mrb[7].mxu0 }
 0x142   : > { %1582 = vst.msk [vmem:[%s2311_s26 + $0x20] sm:$0xff] %vm790_vm9, %v1923_v24  ;;  %v1927_v28 = vadd.f32 %v1926_v23, %v1558_v27 }
 0x143   : > { %1585 = vst.msk [vmem:[%s2311_s26 + $0x38] sm:$0xff] %vm790_vm9, %v1925_v26 }
 0x144   : > { %1583 = vst.msk [vmem:[%s2311_s26 + $0x28] sm:$0xff] %vm790_vm9, %v1927_v28 }
 0x145 PF: > { %s15_s20 = sadd.s32 1, %s2028_s20   ;;  %s2348_s18 = smov %s2024_s19 }
 0x146   : > { %p12_p5 = scmp.ge.s32.totalorder %s15_s20, 4   ;;  %s2349_s19 = smov %s2351_s21 }
 0x148   :  { %14 = sbr.rel (!%p12_p5) target bundleno = 2 (0x2), region = 94 }

</bundles_post_ra>
